<compile_context>
chip_gen: v7x
topology: tpu7x:2x2x1
jax: 0.10.0
libtpu: 0.0.40
codegen_flags: <defaults>
</compile_context>

<pallas_src>
import functools
import math

import numpy as np
import jax
import jax.numpy as jnp
from jax.experimental import pallas as pl
from jax.experimental.pallas import tpu as pltpu

SHIFT = 0
REDUCE = 1
NOP = 2


def _round_up(x, m):
    return ((x + m - 1) // m) * m


# --------------------------- buffers (leaf) kernel ---------------------------
# c = x @ Wc + bc ; h = sigmoid(x @ Wg + bg) * tanh(c), with Wc|Wg fused into a
# single [E, 2*H_pad] weight so x goes through the MXU exactly once.

def _buffers_kernel(x_ref, w_ref, b_ref, h_ref, c_ref, *, H_pad):
    proj = (jnp.dot(x_ref[...], w_ref[...], preferred_element_type=jnp.float32)
            + b_ref[...])
    c = proj[:, :H_pad]
    gate = jax.nn.sigmoid(proj[:, H_pad:])
    c_ref[...] = c
    h_ref[...] = gate * jnp.tanh(c)


def _pick_row_tile(rows):
    """Pick a row tile so padding waste stays small (mem-bound pass)."""
    rows8 = _round_up(rows, 8)
    if rows8 <= 1024:
        return rows8, rows8
    for tm in (1024, 768, 512, 384, 256, 128, 64, 32, 16, 8):
        rows_pad = _round_up(rows8, tm)
        if rows_pad - rows <= max(rows // 10, 8):
            return tm, rows_pad
    return 8, rows8


def pallas_buffers(x2d, w_buf, b_buf, H_pad, tm):
    rows, E = x2d.shape
    grid = (rows // tm,)
    return pl.pallas_call(
        functools.partial(_buffers_kernel, H_pad=H_pad),
        out_shape=(jax.ShapeDtypeStruct((rows, H_pad), jnp.float32),
                   jax.ShapeDtypeStruct((rows, H_pad), jnp.float32)),
        grid=grid,
        in_specs=[pl.BlockSpec((tm, E), lambda i: (i, 0)),
                  pl.BlockSpec((E, 2 * H_pad), lambda i: (0, 0)),
                  pl.BlockSpec((1, 2 * H_pad), lambda i: (0, 0))],
        out_specs=(pl.BlockSpec((tm, H_pad), lambda i: (i, 0)),
                   pl.BlockSpec((tm, H_pad), lambda i: (i, 0))),
        compiler_params=pltpu.CompilerParams(dimension_semantics=("parallel",)),
    )(x2d, w_buf, b_buf)


# ------------------------ fused shift/reduce tree kernel ---------------------
# Single pallas_call, grid=(1,).  The schedule walk is an in-kernel pl.loop;
# per-batch (h, c) stacks are persistent VMEM scratch [B*STACK, H_pad]
# (row = b*STACK + slot); buffers index with row = b*T + time.  Scalar index
# tables (op, left-child slot, buffer index, destination slot, per-step
# any-reduce flag, final slot) are scalar-prefetched into SMEM.

def _tree_kernel(op_ref, srcl_ref, sbuf_ref, dest_ref, anyred_ref, fin_ref,
                 bh_ref, bc_ref, wcell_ref, bcell_ref, wout_ref, bout_ref,
                 out_ref,
                 stack_h, stack_c, ch, cc, hnew, cnew, finh,
                 *, B, T, STACK, H_pad, S):
    # One-time init (grid has a single step).  Zero stacks so degenerate
    # schedules and padded rows read exact zeros.
    stack_h[...] = jnp.zeros_like(stack_h)
    stack_c[...] = jnp.zeros_like(stack_c)
    ch[...] = jnp.zeros_like(ch)
    cc[...] = jnp.zeros_like(cc)
    hnew[...] = jnp.zeros_like(hnew)
    cnew[...] = jnp.zeros_like(cnew)
    finh[...] = jnp.zeros_like(finh)

    @pl.loop(0, S)
    def _step(s):
        # ---- Stages 1+2 only when at least one batch row REDUCEs now. ----
        @pl.when(anyred_ref[s] != 0)
        def _reduce_phase():
            # Un-predicated gather: non-REDUCE rows (srcl defaults to 0)
            # produce values that are never written back.  Left/right child
            # are adjacent stack slots, so ONE 2-row dynamic slice fetches
            # both for h and for c.
            for b in range(B):
                rl = b * STACK + srcl_ref[s * B + b]
                two_h = stack_h[pl.ds(rl, 2), :]
                two_c = stack_c[pl.ds(rl, 2), :]
                ch[b:b + 1, :H_pad] = two_h[0:1, :]
                ch[b:b + 1, H_pad:] = two_h[1:2, :]
                cc[b:b + 1, :H_pad] = two_c[0:1, :]
                cc[b:b + 1, H_pad:] = two_c[1:2, :]

            # One fused matmul for all five gates (lane-dense 5*H_pad cols).
            # Combine gate-by-gate to keep only 2-3 gate tiles live.
            proj = (jnp.dot(ch[...], wcell_ref[...],
                            preferred_element_type=jnp.float32)
                    + bcell_ref[...])
            c_n = jax.nn.sigmoid(proj[:, 1 * H_pad:2 * H_pad]) * cc[:, :H_pad]
            c_n = c_n + jax.nn.sigmoid(proj[:, 2 * H_pad:3 * H_pad]) * cc[:, H_pad:]
            c_n = c_n + (jax.nn.sigmoid(proj[:, 0 * H_pad:1 * H_pad])
                         * jnp.tanh(proj[:, 3 * H_pad:4 * H_pad]))
            cnew[...] = c_n
            hnew[...] = (jax.nn.sigmoid(proj[:, 4 * H_pad:5 * H_pad])
                         * jnp.tanh(c_n))

        # ---- Stage 3: merged write-back, one conditional per batch row. ----
        for b in range(B):
            idx = s * B + b
            op = op_ref[idx]
            drow = b * STACK + dest_ref[idx]
            brow = b * T + sbuf_ref[idx]

            @pl.when(op != NOP)
            def _push(b=b, op=op, drow=drow, brow=brow):
                is_red = op == REDUCE
                hval = jnp.where(is_red, hnew[b:b + 1, :],
                                 bh_ref[pl.ds(brow, 1), :])
                cval = jnp.where(is_red, cnew[b:b + 1, :],
                                 bc_ref[pl.ds(brow, 1), :])
                stack_h[pl.ds(drow, 1), :] = hval
                stack_c[pl.ds(drow, 1), :] = cval

    # ---- Epilogue: fused classifier on the root h of every stack. ----
    for b in range(B):
        frow = b * STACK + fin_ref[b]
        finh[b:b + 1, :] = stack_h[pl.ds(frow, 1), :]
    out_ref[...] = (jnp.dot(finh[...], wout_ref[...],
                            preferred_element_type=jnp.float32)
                    + bout_ref[...])


def pallas_tree_reduce(bh, bc, padded, schedule, B, T, H_pad, O_pad):
    op, srcl, sbuf, dest, anyred, finidx = schedule
    S = anyred.shape[0]
    STACK = T
    B_pad = _round_up(B, 8)
    rows_pad = bh.shape[0]
    stack_rows = _round_up(B * STACK, 8)

    im = lambda i, p0, p1, p2, p3, p4, p5: (0, 0)   # full-block, constant

    kernel = functools.partial(_tree_kernel, B=B, T=T, STACK=STACK,
                               H_pad=H_pad, S=S)
    grid_spec = pltpu.PrefetchScalarGridSpec(
        num_scalar_prefetch=6,
        grid=(1,),
        in_specs=[pl.BlockSpec((rows_pad, H_pad), im),       # buffers h
                  pl.BlockSpec((rows_pad, H_pad), im),       # buffers c
                  pl.BlockSpec((2 * H_pad, 5 * H_pad), im),  # fused cell weight
                  pl.BlockSpec((1, 5 * H_pad), im),          # fused cell bias
                  pl.BlockSpec((H_pad, O_pad), im),          # classifier weight
                  pl.BlockSpec((1, O_pad), im)],             # classifier bias
        out_specs=pl.BlockSpec((B_pad, O_pad), im),
        scratch_shapes=[pltpu.VMEM((stack_rows, H_pad), jnp.float32),  # stack h
                        pltpu.VMEM((stack_rows, H_pad), jnp.float32),  # stack c
                        pltpu.VMEM((B_pad, 2 * H_pad), jnp.float32),   # children h
                        pltpu.VMEM((B_pad, 2 * H_pad), jnp.float32),   # children c
                        pltpu.VMEM((B_pad, H_pad), jnp.float32),       # h_new
                        pltpu.VMEM((B_pad, H_pad), jnp.float32),       # c_new
                        pltpu.VMEM((B_pad, H_pad), jnp.float32)],      # final h
    )

    # Explicit VMEM budget: stacks + resident bh/bc + fused weights + scratch
    # (with double-buffering headroom), instead of the default scoped limit.
    est = 4 * (2 * stack_rows * H_pad
               + 2 * rows_pad * H_pad
               + 2 * H_pad * 5 * H_pad + 5 * H_pad
               + H_pad * O_pad + O_pad
               + B_pad * (4 * H_pad + 3 * H_pad + O_pad))
    vmem_limit = int(min(max(2 * est + (4 << 20), 32 << 20), 64 << 20))

    return pl.pallas_call(
        kernel,
        out_shape=jax.ShapeDtypeStruct((B_pad, O_pad), jnp.float32),
        grid_spec=grid_spec,
        compiler_params=pltpu.CompilerParams(
            dimension_semantics=("arbitrary",),
            vmem_limit_bytes=vmem_limit),
    )(jnp.asarray(op, jnp.int32), jnp.asarray(srcl, jnp.int32),
      jnp.asarray(sbuf, jnp.int32), jnp.asarray(dest, jnp.int32),
      jnp.asarray(anyred, jnp.int32), jnp.asarray(finidx, jnp.int32),
      bh, bc, padded["w_cell"], padded["b_cell"],
      padded["w_out"], padded["b_out"])


# --------------------------- host-side schedule ------------------------------

def build_schedule(transitions, T):
    """Turn [2T-1, B] SHIFT/REDUCE ops into flat int32 index tables.
    The right child is always `src_l + 1`, so only the left slot is stored."""
    transitions = np.asarray(transitions)
    S, B = transitions.shape
    op = np.full((S, B), NOP, np.int32)
    src_l = np.zeros((S, B), np.int32)
    src_buf = np.zeros((S, B), np.int32)
    dest = np.zeros((S, B), np.int32)
    any_red = np.zeros((S,), np.int32)
    buf_ptr = [T - 1] * B        # buffers are popped from the end
    sp = [0] * B                 # stack depth per batch element
    for s in range(S):
        for b in range(B):
            tr = int(transitions[s, b])
            if tr == SHIFT:
                assert buf_ptr[b] >= 0, "Buffer exhausted!"
                op[s, b] = SHIFT
                src_buf[s, b] = buf_ptr[b]
                dest[s, b] = sp[b]
                buf_ptr[b] -= 1
                sp[b] += 1
            elif tr == REDUCE:
                assert sp[b] >= 2, "Stack too small!"
                op[s, b] = REDUCE
                src_l[s, b] = sp[b] - 2      # right child = src_l + 1
                dest[s, b] = sp[b] - 2
                sp[b] -= 1
                any_red[s] = 1
    final_idx = np.asarray([max(p - 1, 0) for p in sp], np.int32)
    return (op.reshape(-1), src_l.reshape(-1), src_buf.reshape(-1),
            dest.reshape(-1), any_red, final_idx)


# ------------------------------- parameters ----------------------------------

def init_params(key, vocab_size, E, H, O, pad_idx=0):
    ks = jax.random.split(key, 9)

    def unif(k, shape, scale):
        return jax.random.uniform(k, shape, jnp.float32, -scale, scale)

    s_e = 1.0 / math.sqrt(E)
    s_h = 1.0 / math.sqrt(H)
    return {
        # nn.Embedding(V, E, padding_idx=pad_idx)
        "embed": jax.random.normal(ks[0], (vocab_size, E), jnp.float32)
                    .at[pad_idx].set(0.0),
        # proj_x / proj_x_gate : nn.Linear(E, H)  (stored pre-transposed [E,H])
        "proj_x_w": unif(ks[1], (E, H), s_e), "proj_x_b": unif(ks[2], (H,), s_e),
        "proj_g_w": unif(ks[3], (E, H), s_e), "proj_g_b": unif(ks[4], (H,), s_e),
        # reduce_layer : nn.Linear(2H, 5H)  (stored pre-transposed [2H,5H])
        "cell_w": unif(ks[5], (2 * H, 5 * H), s_h),
        "cell_b": unif(ks[6], (5 * H,), s_h),
        # output layer : nn.Linear(H, O)
        "out_w": unif(ks[7], (H, O), s_h), "out_b": unif(ks[8], (O,), s_h),
    }


def pad_params(params, E, H, H_pad, O, O_pad):
    """Lane-dense, 128-padded fused weights.  Padded lanes are all-zero, so
    padded c/h stay exactly 0 through the whole recursion."""
    wx = jnp.zeros((E, H_pad), jnp.float32).at[:, :H].set(params["proj_x_w"])
    wg = jnp.zeros((E, H_pad), jnp.float32).at[:, :H].set(params["proj_g_w"])
    w_buf = jnp.concatenate([wx, wg], axis=1)                    # [E, 2*H_pad]
    b_buf = (jnp.zeros((1, 2 * H_pad), jnp.float32)
             .at[0, :H].set(params["proj_x_b"])
             .at[0, H_pad:H_pad + H].set(params["proj_g_b"]))

    w_cell = jnp.zeros((2 * H_pad, 5 * H_pad), jnp.float32)
    b_cell = jnp.zeros((1, 5 * H_pad), jnp.float32)
    for part in range(2):            # left-child rows, right-child rows
        for gate in range(5):        # i, fl, fr, g, o
            blk = params["cell_w"][part * H:(part + 1) * H,
                                   gate * H:(gate + 1) * H]
            w_cell = w_cell.at[part * H_pad:part * H_pad + H,
                               gate * H_pad:gate * H_pad + H].set(blk)
    for gate in range(5):
        b_cell = b_cell.at[0, gate * H_pad:gate * H_pad + H].set(
            params["cell_b"][gate * H:(gate + 1) * H])

    w_out = jnp.zeros((H_pad, O_pad), jnp.float32).at[:H, :O].set(params["out_w"])
    b_out = jnp.zeros((1, O_pad), jnp.float32).at[0, :O].set(params["out_b"])
    return dict(w_buf=w_buf, b_buf=b_buf, w_cell=w_cell, b_cell=b_cell,
                w_out=w_out, b_out=b_out)


# --------------------------------- forward -----------------------------------

def treelstm_classifier_forward(params, token_ids, transitions):
    B, T = token_ids.shape
    E, H = params["proj_x_w"].shape
    O = params["out_w"].shape[1]
    H_pad = _round_up(H, 128)
    O_pad = _round_up(O, 128)

    padded = pad_params(params, E, H, H_pad, O, O_pad)

    # Embedding lookup stays in XLA; flatten to rows for the buffers kernel.
    emb = jnp.take(params["embed"], token_ids, axis=0).reshape(B * T, E)
    rows = B * T
    tm, rows_pad = _pick_row_tile(rows)
    x2d = jnp.zeros((rows_pad, E), jnp.float32).at[:rows].set(emb)

    bh, bc = pallas_buffers(x2d, padded["w_buf"], padded["b_buf"], H_pad, tm)

    schedule = build_schedule(np.asarray(transitions), T)
    logits_pad = pallas_tree_reduce(bh, bc, padded, schedule, B, T, H_pad, O_pad)
    return logits_pad[:B, :O]


# --------------------------- numpy reference (check) --------------------------

def _np_sigmoid(x):
    return 1.0 / (1.0 + np.exp(-x))


def reference_forward(params, token_ids, transitions):
    embed = np.asarray(params["embed"])
    wx, bx = np.asarray(params["proj_x_w"]), np.asarray(params["proj_x_b"])
    wg, bg = np.asarray(params["proj_g_w"]), np.asarray(params["proj_g_b"])
    wc, bc = np.asarray(params["cell_w"]), np.asarray(params["cell_b"])
    wo, bo = np.asarray(params["out_w"]), np.asarray(params["out_b"])
    ids = np.asarray(token_ids)
    B, T = ids.shape

    emb = embed[ids]                                        # [B, T, E]
    c_buf = emb @ wx + bx                                   # [B, T, H]
    h_buf = _np_sigmoid(emb @ wg + bg) * np.tanh(c_buf)

    def cell(hl, cl, hr, cr):
        ch = np.concatenate([hl, hr])
        proj = ch @ wc + bc
        i, fl, fr, g, o = np.split(proj, 5)
        i, fl, fr = _np_sigmoid(i), _np_sigmoid(fl), _np_sigmoid(fr)
        g, o = np.tanh(g), _np_sigmoid(o)
        c = fl * cl + fr * cr + i * g
        return o * np.tanh(c), c

    transitions = np.asarray(transitions)
    buf_ptr = [T - 1] * B
    stacks = [[] for _ in range(B)]
    for t_batch in transitions:
        for b, tr in enumerate(t_batch):
            if tr == SHIFT:
                t = buf_ptr[b]; buf_ptr[b] -= 1
                stacks[b].append((h_buf[b, t], c_buf[b, t]))
            elif tr == REDUCE:
                hr_, cr_ = stacks[b].pop()
                hl_, cl_ = stacks[b].pop()
                stacks[b].append(cell(hl_, cl_, hr_, cr_))
    final = np.stack([stacks[b].pop()[0] for b in range(B)])
    return final @ wo + bo


# ----------------------------------- main -------------------------------------

if __name__ == "__main__":
    B, T, E, H, O, V = 2, 8, 16, 32, 3, 20

    key = jax.random.PRNGKey(0)
    pkey, ikey = jax.random.split(key)
    params = init_params(pkey, V, E, H, O)
    token_ids = jax.random.randint(ikey, (B, T), 1, V, dtype=jnp.int32)

    # valid shift/reduce sequences of length 2T-1 per batch element
    trans0 = [SHIFT, SHIFT] + [REDUCE, SHIFT] * (T - 2) + [REDUCE]  # left-branching
    trans1 = [SHIFT] * T + [REDUCE] * (T - 1)                       # fully stacked
    transitions = np.stack([trans0, trans1], axis=1).astype(np.int32)  # [2T-1, B]

    logits = treelstm_classifier_forward(params, token_ids, transitions)
    logits = jax.block_until_ready(logits)
    assert logits.shape == (B, O)

    ref = reference_forward(params, token_ids, transitions)
    np.testing.assert_allclose(np.asarray(logits), ref, rtol=2e-3, atol=2e-3)

    print("KERNEL_OK")
</pallas_src>

<mosaic_0001>
module attributes {stable_mosaic.version = 11 : i64} {
  func.func @_buffers_kernel(%arg0: i32, %arg1: memref<16x16xf32, #tpu.memory_space<vmem>>, %arg2: memref<16x256xf32, #tpu.memory_space<vmem>>, %arg3: memref<1x256xf32, #tpu.memory_space<vmem>>, %arg4: memref<16x128xf32, #tpu.memory_space<vmem>>, %arg5: memref<16x128xf32, #tpu.memory_space<vmem>>) attributes {dimension_semantics = [#tpu.dimension_semantics<parallel>], iteration_bounds = array<i64: 1>, scalar_prefetch = 0 : i64, scratch_operands = 0 : i64, tpu.core_type = #tpu.core_type<tc>, window_params = [{transform_indices = @transform_0, window_bounds = array<i64: 16, 16>}, {pipeline_mode = #tpu.pipeline_mode<synchronous>, transform_indices = @transform_1, window_bounds = array<i64: 16, 256>}, {pipeline_mode = #tpu.pipeline_mode<synchronous>, transform_indices = @transform_2, window_bounds = array<i64: 1, 256>}, {transform_indices = @transform_3, window_bounds = array<i64: 16, 128>}, {transform_indices = @transform_4, window_bounds = array<i64: 16, 128>}]} {
    %c0 = arith.constant 0 : index
    %c0_0 = arith.constant 0 : index
    %0 = vector.load %arg1[%c0, %c0_0] : memref<16x16xf32, #tpu.memory_space<vmem>>, vector<16x16xf32>
    %c0_1 = arith.constant 0 : index
    %c0_2 = arith.constant 0 : index
    %1 = vector.load %arg2[%c0_1, %c0_2] : memref<16x256xf32, #tpu.memory_space<vmem>>, vector<16x256xf32>
    %cst = arith.constant dense<0.000000e+00> : vector<16x256xf32>
    %2 = tpu.matmul %0, %1, %cst {dimension_numbers = #tpu.dot_dimension_numbers<[1], [0], [0], [1], [0, 0, 1, 1], [], []>} : vector<16x16xf32>, vector<16x256xf32>, vector<16x256xf32> -> vector<16x256xf32>
    %c0_3 = arith.constant 0 : index
    %c0_4 = arith.constant 0 : index
    %3 = vector.load %arg3[%c0_3, %c0_4] : memref<1x256xf32, #tpu.memory_space<vmem>>, vector<1x256xf32>
    %4 = vector.broadcast %3 : vector<1x256xf32> to vector<16x256xf32>
    %5 = arith.addf %2, %4 : vector<16x256xf32>
    %6 = vector.extract_strided_slice %5 {offsets = [0, 0], sizes = [16, 128], strides = [1, 1]} : vector<16x256xf32> to vector<16x128xf32>
    %7 = vector.extract_strided_slice %5 {offsets = [0, 128], sizes = [16, 128], strides = [1, 1]} : vector<16x256xf32> to vector<16x128xf32>
    %8 = arith.negf %7 : vector<16x128xf32>
    %9 = math.exp %8 : vector<16x128xf32>
    %cst_5 = arith.constant 1.000000e+00 : f32
    %10 = vector.broadcast %cst_5 : f32 to vector<16x128xf32>
    %11 = arith.addf %10, %9 : vector<16x128xf32>
    %12 = arith.divf %10, %11 : vector<16x128xf32>
    %c0_6 = arith.constant 0 : index
    %c0_7 = arith.constant 0 : index
    %13 = vector.load %arg5[%c0_6, %c0_7] : memref<16x128xf32, #tpu.memory_space<vmem>>, vector<16x128xf32>
    tpu.vector_store %arg5[%c0_6, %c0_7], %6 {strides = array<i32>} : memref<16x128xf32, #tpu.memory_space<vmem>>, vector<16x128xf32>,
    %14 = math.tanh %6 : vector<16x128xf32>
    %15 = arith.mulf %12, %14 : vector<16x128xf32>
    %c0_8 = arith.constant 0 : index
    %c0_9 = arith.constant 0 : index
    %16 = vector.load %arg4[%c0_8, %c0_9] : memref<16x128xf32, #tpu.memory_space<vmem>>, vector<16x128xf32>
    tpu.vector_store %arg4[%c0_8, %c0_9], %15 {strides = array<i32>} : memref<16x128xf32, #tpu.memory_space<vmem>>, vector<16x128xf32>,
    return
  }
  func.func @transform_0(%arg0: i32) -> (i32, i32) {
    %c0_i32 = arith.constant 0 : i32
    %c0_i32_0 = arith.constant 0 : i32
    return %arg0, %c0_i32 : i32, i32
  }
  func.func @transform_1(%arg0: i32) -> (i32, i32) {
    %c0_i32 = arith.constant 0 : i32
    %c0_i32_0 = arith.constant 0 : i32
    %c0_i32_1 = arith.constant 0 : i32
    return %c0_i32, %c0_i32_0 : i32, i32
  }
  func.func @transform_2(%arg0: i32) -> (i32, i32) {
    %c0_i32 = arith.constant 0 : i32
    %c0_i32_0 = arith.constant 0 : i32
    %c0_i32_1 = arith.constant 0 : i32
    return %c0_i32, %c0_i32_0 : i32, i32
  }
  func.func @transform_3(%arg0: i32) -> (i32, i32) {
    %c0_i32 = arith.constant 0 : i32
    %c0_i32_0 = arith.constant 0 : i32
    return %arg0, %c0_i32 : i32, i32
  }
  func.func @transform_4(%arg0: i32) -> (i32, i32) {
    %c0_i32 = arith.constant 0 : i32
    %c0_i32_0 = arith.constant 0 : i32
    return %arg0, %c0_i32 : i32, i32
  }
}

</mosaic_0001>

<bundles_post_ra>
// kernel: tpu_custom_call.1
= control target key start
LH: loop header
LB: loop body
LE: loop exit
PB: predicated region body
PF: predicated region fallthrough
CT: control target
= control target key end

     0   :  { %10 = vsyncpa [#allocation3], 0  ;;  %s423_s0 = inlined_call_operand.hbm [shape: f32[16,16], index: 0, kind: input, shape index: {}]   ;;  %s424_s1 = inlined_call_operand.hbm [shape: f32[16,256], index: 1, kind: input, shape index: {}]   ;;  %s425_s2 = inlined_call_operand.vmem [shape: f32[1,256], index: 2, kind: input, shape index: {}]   ;;  %s426_s3 = inlined_call_operand.hbm [shape: f32[16,128], index: 3, kind: output, shape index: {0}]   ;;  %s427_s4 = inlined_call_operand.hbm [shape: f32[16,128], index: 4, kind: output, shape index: {1}]  }
   0x1   :  { %11 = vsyncpa [#allocation6], 0 }
   0x2   :  { %12 = vsyncpa [#allocation4], 0 }
   0x3   :  { %13 = vsyncpa [#allocation9], 0  ;;  %s329_s15 = smov [#allocation2]   ;;  %s233_s19 = scalar_lea.hbm %s423_s0, 256 }
   0x4   :  { %s19_s16 = sshll.u32 %s329_s15, 4  ;;  %p234_p0 = scmp.ne.s32.totalorder %s423_s0, %s233_s19  ;;  %s20_s16 = int_to_ptr.vmem [resolvable:$true] %s19_s16 }
   0x5   :  { %p237_p1 = scmp.lt.u32.totalorder %s233_s19, %s423_s0 }
   0x7   :  { %p239_p2 = pnand %p237_p1, %p234_p0 }
   0x9   :  { %242 = shalt.err (!%p239_p2)
}
   0xa   :  { %s243_s24 = scalar_lea.vmem %s20_s16, 256  ;;  %p248_p4 = scmp.lt.s32.totalorder %s20_s16, %s20_s16 }
   0xb   :  { %p244_p3 = scmp.ne.s32.totalorder %s20_s16, %s243_s24  ;;  %p249_p5 = scmp.lt.s32.totalorder %s243_s24, %s243_s24 }
   0xd   :  { %p250_p6 = por %p249_p5, %p248_p4 }
   0xf   :  { %p251_p7 = pnand %p250_p6, %p244_p3 }
  0x11   :  { %254 = shalt.err (!%p251_p7)
}
  0x12   :  { %s330_s25 = smov 128   ;;  %s331_s26 = smov 8  }
  0x13   :  { %25 = dma.hbm_to_vmem [thread:$0]  %s423_s0, 256, %s20_s16, [#allocation3], %s330_s25, %s330_s25, %s331_s26  }
  0x14   :  { %s332_s29 = smov [#allocation5]   ;;  %s255_s7 = scalar_lea.hbm %s424_s1, 512 }
  0x15   :  { %s31_s30 = sshll.u32 %s332_s29, 4  ;;  %p256_p8 = scmp.ne.s32.totalorder %s424_s1, %s255_s7  ;;  %s32_s30 = int_to_ptr.vmem [resolvable:$true] %s31_s30 }
  0x16   :  { %p259_p9 = scmp.lt.u32.totalorder %s255_s7, %s424_s1 }
  0x18   :  { %p261_p10 = pnand %p259_p9, %p256_p8 }
  0x1a   :  { %264 = shalt.err (!%p261_p10)
}
  0x1b   :  { %s265_s12 = scalar_lea.vmem %s32_s30, 512  ;;  %p270_p12 = scmp.lt.s32.totalorder %s32_s30, %s32_s30 }
  0x1c   :  { %p266_p11 = scmp.ne.s32.totalorder %s32_s30, %s265_s12  ;;  %p271_p13 = scmp.lt.s32.totalorder %s265_s12, %s265_s12 }
  0x1e   :  { %p272_p0 = por %p271_p13, %p270_p12 }
  0x20   :  { %p273_p1 = pnand %p272_p0, %p266_p11 }
  0x22   :  { %276 = shalt.err (!%p273_p1)
}
  0x23   :  { %s333_s0 = smov 256   ;;  %s334_s13 = smov 16  }
  0x24   :  { %37 = dma.hbm_to_vmem [thread:$0]  %s424_s1, 512, %s32_s30, [#allocation6], %s333_s0, %s333_s0, %s334_s13  }
  0x25   :  { %321 = dma.done.wait [#allocation3], 256  }
  0x26   :  { %322 = vsyncadd [#allocation3], 4294967040 }
  0x27   :  { %323 = dma.done.wait [#allocation6], 512  }
  0x28   :  { %324 = vsyncadd [#allocation6], 4294966784  ;;  %v335_v0 = vmov 0.0   ;;  %v49_v1 = vld [vmem:[#allocation5 + $0x8] sm:$0xff]  ;;  %v51_v2 = vld [vmem:[#allocation5 + $0x18] sm:$0xff]  ;;  %vm64_vm0 = vcmask 130048   ;;  %v54_v9 = vlaneseq }
  0x29   :  { %135 = vmatprep.mubr.f32.mxu0 %v335_v0  ;;  %141 = vmatprep.mubr.f32.mxu1 %v335_v0  ;;  %v48_v3 = vld [vmem:[#allocation5] sm:$0xff]  ;;  %v206_v4 = vpack.c.bf16 %v51_v2, %v49_v1  ;;  %v50_v5 = vld [vmem:[#allocation5 + $0x10] sm:$0xff]  ;;  %v47_v8 = vld [vmem:[#allocation2 + $0x8] sm:$0xff]  ;;  %s336_s17 = smov [#allocation8]  }
  0x2a   :  { %v208_v6 = vpack.c.bf16 %v50_v5, %v48_v3  ;;  %v46_v7 = vld [vmem:[#allocation2] sm:$0xff]  ;;  %v55_v10 = vshrl.u32 %v54_v9, 7  ;;  %s185_s18 = sshll.u32 %s336_s17, 4  ;;  %s186_s18 = int_to_ptr.vmem [resolvable:$true] %s185_s18 }
  0x2b   :  { %207 = vmatprep.subr.bf16.mxu0 %v206_v4  ;;  %210 = vmatprep.subr.bf16.mxu1 %v206_v4  ;;  %v52_v12 = vld [vmem:[%s425_s2] sm:$0x3]  ;;  %s277_s19 = scalar_lea.vmem %s186_s18, 256  ;;  %p282_p3 = scmp.lt.s32.totalorder %s186_s18, %s186_s18 }
  0x2c   :  { %209 = vmatpush1.bf16.msra.mxu0 %v208_v6  ;;  %211 = vmatpush1.bf16.msra.mxu1 %v208_v6  ;;  %v56_v11 = vsub.s32 0, %v55_v10  ;;  %v60_v13 = vsub.s32 1, %v55_v10  ;;  %p278_p2 = scmp.ne.s32.totalorder %s186_s18, %s277_s19  ;;  %p283_p4 = scmp.lt.s32.totalorder %s277_s19, %s277_s19 }
  0x2e   :  { %v57_v14 = vrot.slane %v52_v12, %v56_v11  ;;  %v61_v15 = vrot.slane %v52_v12, %v60_v13  ;;  %p284_p5 = por %p283_p4, %p282_p3 }
  0x2f   :  { %202 = vmatmul.mubr.msk.f32.vlgmr.msra.gmra.mrb[0].mxu0 %vm64_vm0, %v46_v7  ;;  %203 = vmatmul.mubr.msk.f32.vlgmr.msra.gmra.mrb[0].mxu1 %vm64_vm0, %v47_v8 }
  0x30   :  { %p285_p6 = pnand %p284_p5, %p278_p2 }
 0x102   :  { %v137_v16 = vpop.f32.mrb[0].mxu0  ;;  %v143_v17 = vpop.f32.mrb[0].mxu1 }
 0x103   :  { %v138_v18 = vadd.f32 %v137_v16, %v57_v14  ;;  %v144_v19 = vadd.f32 %v143_v17, %v57_v14  ;;  %v139_v20 = vpop.f32.mrb[1].mxu0  ;;  %v145_v21 = vpop.f32.mrb[1].mxu1 }
 0x104   :  { %v140_v22 = vadd.f32 %v139_v20, %v61_v15  ;;  %v146_v23 = vadd.f32 %v145_v21, %v61_v15 }
 0x105   :  { %160 = vst [vmem:[#allocation8] sm:$0xff] %v138_v18  ;;  %161 = vst [vmem:[#allocation8 + $0x8] sm:$0xff] %v144_v19 }
 0x106   :  { %v204_v24 = vmul.f32 -1.442695, %v140_v22  ;;  %v205_v25 = vmul.f32 -1.442695, %v146_v23 }
 0x107   :  { %288 = shalt.err (!%p285_p6)
}
 0x108   :  { %s289_s21 = scalar_lea.hbm %s427_s4, 256 }
 0x109   :  { %p290_p7 = scmp.ne.s32.totalorder %s427_s4, %s289_s21  ;;  %p293_p8 = scmp.lt.u32.totalorder %s289_s21, %s427_s4 }
 0x10b   :  { %p295_p9 = pnand %p293_p8, %p290_p7 }
 0x10d   :  { %298 = shalt.err (!%p295_p9)
}
 0x10e   :  { %191 = dma.vmem_to_hbm [thread:$0]  %s186_s18, 256, %s427_s4, [#allocation9], %s330_s25, %s330_s25, %s331_s26   ;;  %221 = vpow2.f32 %v204_v24 }
 0x10f   :  { %223 = vpow2.f32 %v205_v25  ;;  %s337_s30 = smov [#allocation7]  }
 0x110   :  { %225 = vtanh.f32 %v138_v18  ;;  %s173_s5 = sshll.u32 %s337_s30, 4  ;;  %s174_s5 = int_to_ptr.vmem [resolvable:$true] %s173_s5 }
 0x111   :  { %227 = vtanh.f32 %v144_v19  ;;  %s299_s4 = scalar_lea.vmem %s174_s5, 256  ;;  %p304_p11 = scmp.lt.s32.totalorder %s174_s5, %s174_s5 }
 0x112   :  { %p300_p10 = scmp.ne.s32.totalorder %s174_s5, %s299_s4  ;;  %p305_p12 = scmp.lt.s32.totalorder %s299_s4, %s299_s4 }
 0x114   :  { %p306_p13 = por %p305_p12, %p304_p11 }
 0x116   :  { %p307_p0 = pnand %p306_p13, %p300_p10 }
 0x118   :  { %v222_v26 = vpop.eup %221 }
 0x119   :  { %v224_v27 = vpop.eup %223  ;;  %v154_v28 = vadd.f32 1.0, %v222_v26 }
 0x11a   :  { %v155_v29 = vadd.f32 1.0, %v224_v27  ;;  %v226_v30 = vpop.eup %225 }
 0x11b   :  { %229 = vrcp.f32 %v154_v28  ;;  %v228_v31 = vpop.eup %227 }
 0x11c   :  { %231 = vrcp.f32 %v155_v29 }
 0x125   :  { %v230_v32 = vpop.eup %229 }
 0x126   :  { %v232_v33 = vpop.eup %231  ;;  %v164_v34 = vmul.f32 %v230_v32, %v226_v30 }
 0x127   :  { %v165_v35 = vmul.f32 %v232_v33, %v228_v31 }
 0x128   :  { %166 = vst [vmem:[#allocation7] sm:$0xff] %v164_v34 }
 0x129   :  { %167 = vst [vmem:[#allocation7 + $0x8] sm:$0xff] %v165_v35 }
 0x12a   :  { %310 = shalt.err (!%p307_p0)
}
 0x12b   :  { %s311_s8 = scalar_lea.hbm %s426_s3, 256 }
 0x12c   :  { %p312_p1 = scmp.ne.s32.totalorder %s426_s3, %s311_s8  ;;  %p315_p2 = scmp.lt.u32.totalorder %s311_s8, %s426_s3 }
 0x12e   :  { %p317_p3 = pnand %p315_p2, %p312_p1 }
 0x130   :  { %320 = shalt.err (!%p317_p3)
}
 0x131   :  { %179 = dma.vmem_to_hbm [thread:$0]  %s174_s5, 256, %s426_s3, [#allocation4], %s330_s25, %s330_s25, %s331_s26  }
 0x132   :  { %325 = dma.done.wait [#allocation4], 256  }
 0x133   :  { %326 = vsyncadd [#allocation4], 4294967040 }
 0x134   :  { %327 = dma.done.wait [#allocation9], 256  }
 0x135   :  { %328 = vsyncadd [#allocation9], 4294967040 }
 0x136   :  { %198 = vsyncpa [#allocation3], 1 }
 0x137   :  { %199 = vsyncpa [#allocation6], 1 }
 0x138   :  { %200 = vsyncpa [#allocation4], 1 }
 0x139   :  { %201 = vsyncpa [#allocation9], 1 }

</bundles_post_ra>
